<compile_context>
chip_gen: v6e
topology: v6e:2x2x1
jax: 0.10.0
libtpu: 0.0.40
codegen_flags: <defaults>
</compile_context>

<pallas_src>
import functools

import jax
import jax.numpy as jnp
from jax.experimental import pallas as pl
from jax.experimental.pallas import tpu as pltpu


# ---------------------------------------------------------------------------
# Generation-aware budgets
# ---------------------------------------------------------------------------
def _budgets():
    try:
        cap = int(pltpu.get_tpu_info().vmem_capacity_bytes)
    except Exception:
        return 48 * 1024 * 1024, 256          # conservative fallback
    if cap <= 64 * 1024 * 1024:               # v7x-class parts: leave headroom
        return 40 * 1024 * 1024, 256
    return 96 * 1024 * 1024, 512              # v5e/v6e: 128 MiB physical VMEM


_VMEM_LIMIT, _ATTN_ROW_PREF = _budgets()
_MM_TILE_PREF = 512


# ---------------------------------------------------------------------------
# Tile-size helpers (always return a divisor of `dim`, or the full extent)
# ---------------------------------------------------------------------------
def _row_tile(dim, pref):
    """Second-to-last-dim tile: multiple of 32 or full extent."""
    if dim <= pref:
        return dim
    for t in (pref, 256, 128, 64, 32):
        if t <= pref and dim % t == 0:
            return t
    return dim  # TODO(synk): ragged row tiles (non 32-multiple dims) fall back to full extent


def _col_tile(dim, pref):
    """Last-dim tile: multiple of 128 or full extent."""
    if dim <= pref:
        return dim
    for t in (pref, 256, 128):
        if t <= pref and dim % t == 0:
            return t
    return dim  # TODO(synk): ragged column tiles fall back to full extent


# ---------------------------------------------------------------------------
# Tiled projection matmul:  x (M,K) f32 @ w (K,N) f32 -> (M,N) bf16
# ---------------------------------------------------------------------------
def _matmul_kernel(x_ref, w_ref, o_ref, acc_ref):
    @pl.when(pl.program_id(2) == 0)
    def _():
        acc_ref[...] = jnp.zeros_like(acc_ref)

    acc_ref[...] += jnp.dot(x_ref[...].astype(jnp.bfloat16),
                            w_ref[...].astype(jnp.bfloat16),
                            preferred_element_type=jnp.float32)

    @pl.when(pl.program_id(2) == pl.num_programs(2) - 1)
    def _():
        o_ref[...] = acc_ref[...].astype(o_ref.dtype)


def matmul(x, w, out_dtype=jnp.bfloat16):
    M, K = x.shape
    K2, N = w.shape
    assert K == K2
    tm = _row_tile(M, pref=_MM_TILE_PREF)
    tn = _col_tile(N, pref=_MM_TILE_PREF)
    tk = _col_tile(K, pref=_MM_TILE_PREF)
    grid = (M // tm, N // tn, K // tk)
    out_bytes = jnp.dtype(out_dtype).itemsize
    return pl.pallas_call(
        _matmul_kernel,
        out_shape=jax.ShapeDtypeStruct((M, N), out_dtype),
        grid=grid,
        in_specs=[
            pl.BlockSpec((tm, tk), lambda i, j, k: (i, k)),
            pl.BlockSpec((tk, tn), lambda i, j, k: (k, j)),
        ],
        out_specs=pl.BlockSpec((tm, tn), lambda i, j, k: (i, j)),
        scratch_shapes=[pltpu.VMEM((tm, tn), jnp.float32)],
        compiler_params=pltpu.CompilerParams(
            dimension_semantics=("parallel", "parallel", "arbitrary"),
            vmem_limit_bytes=_VMEM_LIMIT),
        cost_estimate=pl.CostEstimate(
            flops=int(2 * M * K * N),
            transcendentals=0,
            bytes_accessed=int(4 * (M * K + K * N) + out_bytes * M * N)),
    )(x, w)


# ---------------------------------------------------------------------------
# Fused (channels x heads) dense masked GAT attention.
#   grid = (row_tiles,)  -- channels & heads unrolled inside the body.
# ---------------------------------------------------------------------------
def _gat_attn_kernel(adj_ref, s_ref, t_ref, hd_ref, o_ref, *,
                     n_chnls, n_heads, out_f):
    """One row-tile of all-channel / all-head masked GAT attention.

    adj : (C, tm, N) int8        s : (tm, C*H) f32   (h_src . a_src)
    t   : (C*H, N)  f32          hd: (N, C*D)  bf16
    out : (tm, C*H*D) f32        feature layout [channel][head][dim]
    """
    C, H, D = n_chnls, n_heads, out_f
    s = s_ref[...]                                     # (tm, C*H)
    t = t_ref[...]                                     # (C*H, N)
    hd = hd_ref[...]                                   # (N, C*D) bf16
    tm = s.shape[0]
    neg_big = jnp.float32(-1e30)

    for c in range(C):
        mask = adj_ref[c] != 0                         # (tm, N), straight from int8
        atts = []
        for h in range(H):
            p_idx = c * H + h
            # edge logits = leaky_relu(h_src . a_src + h_dst . a_dst)
            logits = s[:, p_idx:p_idx + 1] + t[p_idx:p_idx + 1, :]   # (tm, N)
            logits = jnp.where(logits >= 0, logits, 0.01 * logits)

            # masked neighborhood softmax (rows = source nodes), all f32
            masked = jnp.where(mask, logits, neg_big)
            mx = jnp.max(masked, axis=-1, keepdims=True)
            p = jnp.where(mask, jnp.exp(masked - mx), 0.0)           # no inf path
            denom = jnp.sum(p, axis=-1, keepdims=True)
            inv = pl.reciprocal(jnp.where(denom > 0, denom, 1.0), approx=True)
            atts.append((p * inv).astype(jnp.bfloat16))              # (tm, N)

        # Single stacked aggregation matmul per channel: (H*tm, N) @ (N, D).
        att_stack = jnp.concatenate(atts, axis=0)
        agg = jnp.dot(att_stack, hd[:, c * D:(c + 1) * D],
                      preferred_element_type=jnp.float32)            # (H*tm, D)
        for h in range(H):
            o_ref[:, (c * H + h) * D:(c * H + h + 1) * D] = \
                agg[h * tm:(h + 1) * tm, :]


def gat_attention(adj, s_src, t_dst, h_dst, *, n_chnls, n_heads, out_f):
    """All channels / heads of masked GAT attention for one direction.

    adj   : (C, M, N) int8 0/1 mask
    s_src : (M, C*H) f32   precomputed h_src . a_src   (per channel/head)
    t_dst : (C*H, N) f32   precomputed a_dst . h_dst^T (per channel/head)
    h_dst : (N, C*D) bf16  projected destination features, channel-major cols
    Returns (M, C*H*D) f32 with features laid out [channel][head][dim].
    """
    C, M, N = adj.shape
    H, D = n_heads, out_f
    assert C == n_chnls
    assert s_src.shape == (M, C * H)
    assert t_dst.shape == (C * H, N)
    assert h_dst.shape == (N, C * D)

    tm = _row_tile(M, pref=_ATTN_ROW_PREF)
    grid = (M // tm,)

    flops = C * H * (8 * M * N) + C * (2 * H * M * N * D)
    bytes_acc = (int(adj.size)
                 + 4 * (M * C * H + C * H * N)
                 + 2 * N * C * D
                 + 4 * M * C * H * D)

    return pl.pallas_call(
        functools.partial(_gat_attn_kernel,
                          n_chnls=C, n_heads=H, out_f=D),
        out_shape=jax.ShapeDtypeStruct((M, C * H * D), jnp.float32),
        grid=grid,
        in_specs=[
            # adj is the only per-step streamed input -> deeper pipelining
            pl.BlockSpec((C, tm, N), lambda i: (0, i, 0),
                         pipeline_mode=pl.Buffered(3)),
            pl.BlockSpec((tm, C * H), lambda i: (i, 0)),
            pl.BlockSpec((C * H, N), lambda i: (0, 0)),   # resident
            pl.BlockSpec((N, C * D), lambda i: (0, 0)),   # resident
        ],
        out_specs=pl.BlockSpec((tm, C * H * D), lambda i: (i, 0)),
        compiler_params=pltpu.CompilerParams(
            dimension_semantics=("parallel",),
            vmem_limit_bytes=_VMEM_LIMIT),
        cost_estimate=pl.CostEstimate(
            flops=int(flops),
            transcendentals=int(C * H * M * N),
            bytes_accessed=int(bytes_acc)),
    )(adj, s_src, t_dst, h_dst)
    # TODO(synk): when 2*N*C*D (bf16 hd) + C*tm*N (adj) exceeds the VMEM budget
    #             (very large graphs on v7x), add a kv grid axis over N with
    #             online-softmax accumulation instead of full-N residency.


# ---------------------------------------------------------------------------
# Parameter initialization (mirrors MCGAT.__init__ / MCGATLayer.__init__)
# ---------------------------------------------------------------------------
def init_mcgat_params(key, n_feats, n_att_heads, n_chnls, reduce_chnl):
    params = []
    n_layers = len(n_feats) - 1
    for li in range(n_layers):
        in_f = n_feats[li]
        out_f = n_feats[li + 1]
        if li > 0:
            in_f *= 2 * n_att_heads * (n_chnls if reduce_chnl == "cat" else 1)
        key, kwu, kwi, kus, kud, kis, kid = jax.random.split(key, 7)
        w_user = 0.1 * jax.random.normal(kwu, (n_chnls, in_f, out_f), jnp.float32)
        w_item = 0.1 * jax.random.normal(kwi, (n_chnls, in_f, out_f), jnp.float32)
        u_src = 0.1 * jax.random.normal(kus, (n_att_heads, n_chnls, out_f), jnp.float32)
        u_dst = 0.1 * jax.random.normal(kud, (n_att_heads, n_chnls, out_f), jnp.float32)
        i_src = 0.1 * jax.random.normal(kis, (n_att_heads, n_chnls, out_f), jnp.float32)
        i_dst = 0.1 * jax.random.normal(kid, (n_att_heads, n_chnls, out_f), jnp.float32)
        # SharedParameter[c]() == sum(params[:c+1])  -> cumulative sums over channels
        w_user = jnp.cumsum(w_user, axis=0)
        w_item = jnp.cumsum(w_item, axis=0)
        params.append(dict(
            out_f=out_f,
            # fused channel projection weight:  x @ [W_0 | ... | W_{C-1}]
            w_user=jnp.transpose(w_user, (1, 0, 2)).reshape(in_f, n_chnls * out_f),
            w_item=jnp.transpose(w_item, (1, 0, 2)).reshape(in_f, n_chnls * out_f),
            u_src=jnp.cumsum(u_src, axis=1),     # (H, C, D)
            u_dst=jnp.cumsum(u_dst, axis=1),
            i_src=jnp.cumsum(i_src, axis=1),
            i_dst=jnp.cumsum(i_dst, axis=1),
        ))
    return params


# ---------------------------------------------------------------------------
# Forward pass (MCGAT.forward == GAT.forward over MCGATLayer's)
# ---------------------------------------------------------------------------
def mcgat_forward(params, u2i, i2u, x_user, x_item,
                  n_att_heads, n_chnls, reduce_chnl, nonlinear):
    # TODO(synk): per-channel node subsetting via adj.uniq_i (gather + index_copy)
    #             is assumed to cover all nodes for this synthetic dense setting.
    n_layers = len(params)
    M = x_user.shape[0]
    N = x_item.shape[0]
    C = n_chnls
    H = n_att_heads
    u_bar, i_bar = x_user, x_item
    h_next = []
    for li, lp in enumerate(params):
        last = li == n_layers - 1
        out_f = lp["out_f"]
        wu = lp["w_user"]                     # (in_f, C*out_f)
        wi = lp["w_item"]
        if li > 0:
            # Next-layer input would be cat([h_prev(=0), u_bar], 1); skip the
            # provably-zero half by slicing the bottom rows of W instead.
            half = wu.shape[0] // 2
            assert half == u_bar.shape[1]
            wu = wu[half:, :]
            wi = wi[half:, :]

        # fused channel projection: x @ [W_0 | ... | W_{C-1}]  (bf16 output)
        hu_all = matmul(u_bar, wu)            # (M, C*D) bf16
        hi_all = matmul(i_bar, wi)            # (N, C*D) bf16

        hu3 = hu_all.reshape(M, C, out_f).astype(jnp.float32)
        hi3 = hi_all.reshape(N, C, out_f).astype(jnp.float32)

        # Hoisted per-(channel, head) score halves (tiny wrapper einsums).
        s_u = jnp.einsum("mcd,hcd->mch", hu3, lp["u_src"]).reshape(M, C * H)
        t_u = jnp.einsum("ncd,hcd->chn", hi3, lp["u_dst"]).reshape(C * H, N)
        s_i = jnp.einsum("ncd,hcd->nch", hi3, lp["i_src"]).reshape(N, C * H)
        t_i = jnp.einsum("mcd,hcd->chm", hu3, lp["i_dst"]).reshape(C * H, M)

        u_att = gat_attention(u2i, s_u, t_u, hi_all,
                              n_chnls=C, n_heads=H, out_f=out_f)   # (M, C*H*D)
        i_att = gat_attention(i2u, s_i, t_i, hu_all,
                              n_chnls=C, n_heads=H, out_f=out_f)   # (N, C*H*D)

        if last:   # reduce_att = mean over heads
            u_r = u_att.reshape(M, C, H, out_f).mean(axis=2)       # (M, C, D)
            i_r = i_att.reshape(N, C, H, out_f).mean(axis=2)
        else:      # reduce_att = cat over heads (already in that layout)
            u_r = u_att.reshape(M, C, H * out_f)
            i_r = i_att.reshape(N, C, H * out_f)

        if reduce_chnl == "cat":
            u_bar = nonlinear(u_r.reshape(M, -1))
            i_bar = nonlinear(i_r.reshape(N, -1))
        else:      # 'sum'
            u_bar = nonlinear(u_r.sum(axis=1))
            i_bar = nonlinear(i_r.sum(axis=1))

        h_next.append((u_bar, i_bar))

    # GAT.forward returns cat([h_prev(=zeros), u_bar], 1) of the final layer.
    u_out = jnp.concatenate([jnp.zeros_like(u_bar), u_bar], axis=1)
    i_out = jnp.concatenate([jnp.zeros_like(i_bar), i_bar], axis=1)
    return u_out, i_out, h_next


# ---------------------------------------------------------------------------
if __name__ == "__main__":
    key = jax.random.PRNGKey(0)

    # model config
    n_feats = [6, 8, 4]      # 2 layers
    n_att_heads = 2
    n_chnls = 3
    reduce_chnl = "cat"
    nonlinear = jax.nn.relu

    # graph sizes
    M, N = 16, 12            # num users, num items

    k_xu, k_xi, k_adj, k_par = jax.random.split(key, 4)
    x_user = jax.random.normal(k_xu, (M, n_feats[0]), jnp.float32)
    x_item = jax.random.normal(k_xi, (N, n_feats[0]), jnp.float32)

    # per-channel dense 0/1 adjacency as int8; i2u is the transpose of u2i
    u2i = (jax.random.uniform(k_adj, (n_chnls, M, N)) < 0.5).astype(jnp.int8)
    i2u = jnp.transpose(u2i, (0, 2, 1))

    params = init_mcgat_params(k_par, n_feats, n_att_heads, n_chnls, reduce_chnl)

    u_out, i_out, h_next = mcgat_forward(
        params, u2i, i2u, x_user, x_item,
        n_att_heads, n_chnls, reduce_chnl, nonlinear)

    jax.block_until_ready(u_out)
    jax.block_until_ready(i_out)
    for ub, ib in h_next:
        jax.block_until_ready(ub)
        jax.block_until_ready(ib)

    # sanity on shapes implied by the module semantics
    assert u_out.shape == (M, 2 * n_chnls * n_feats[-1])
    assert i_out.shape == (N, 2 * n_chnls * n_feats[-1])
    print("KERNEL_OK")
</pallas_src>

<mosaic_0001>
module attributes {stable_mosaic.version = 11 : i64} {
  func.func @_matmul_kernel(%arg0: i32, %arg1: i32, %arg2: i32, %arg3: memref<16x6xf32, #tpu.memory_space<vmem>>, %arg4: memref<6x24xf32, #tpu.memory_space<vmem>>, %arg5: memref<16x24xbf16, #tpu.memory_space<vmem>>, %arg6: memref<16x24xf32, #tpu.memory_space<vmem>>) attributes {dimension_semantics = [#tpu.dimension_semantics<parallel>, #tpu.dimension_semantics<parallel>, #tpu.dimension_semantics<arbitrary>], iteration_bounds = array<i64: 1, 1, 1>, scalar_prefetch = 0 : i64, scratch_operands = 1 : i64, tpu.core_type = #tpu.core_type<tc>, window_params = [{transform_indices = @transform_0, window_bounds = array<i64: 16, 6>}, {transform_indices = @transform_1, window_bounds = array<i64: 6, 24>}, {transform_indices = @transform_2, window_bounds = array<i64: 16, 24>}]} {
    %c0_i32 = arith.constant 0 : i32
    %0 = arith.cmpi eq, %arg2, %c0_i32 : i32
    %1 = arith.extui %0 : i1 to i32
    %c0_i32_0 = arith.constant 0 : i32
    %2 = arith.cmpi ne, %1, %c0_i32_0 : i32
    scf.if %2 {
      %cst_10 = arith.constant 0.000000e+00 : f32
      %14 = vector.broadcast %cst_10 : f32 to vector<16x24xf32>
      %c0_11 = arith.constant 0 : index
      %c0_12 = arith.constant 0 : index
      %15 = vector.load %arg6[%c0_11, %c0_12] : memref<16x24xf32, #tpu.memory_space<vmem>>, vector<16x24xf32>
      tpu.vector_store %arg6[%c0_11, %c0_12], %14 {strides = array<i32>} : memref<16x24xf32, #tpu.memory_space<vmem>>, vector<16x24xf32>,
    } else {
    }
    %c0 = arith.constant 0 : index
    %c0_1 = arith.constant 0 : index
    %3 = vector.load %arg6[%c0, %c0_1] : memref<16x24xf32, #tpu.memory_space<vmem>>, vector<16x24xf32>
    %c0_2 = arith.constant 0 : index
    %c0_3 = arith.constant 0 : index
    %4 = vector.load %arg3[%c0_2, %c0_3] : memref<16x6xf32, #tpu.memory_space<vmem>>, vector<16x6xf32>
    %5 = arith.truncf %4 : vector<16x6xf32> to vector<16x6xbf16>
    %c0_4 = arith.constant 0 : index
    %c0_5 = arith.constant 0 : index
    %6 = vector.load %arg4[%c0_4, %c0_5] : memref<6x24xf32, #tpu.memory_space<vmem>>, vector<6x24xf32>
    %7 = arith.truncf %6 : vector<6x24xf32> to vector<6x24xbf16>
    %cst = arith.constant dense<0.000000e+00> : vector<16x24xf32>
    %8 = tpu.matmul %5, %7, %cst {dimension_numbers = #tpu.dot_dimension_numbers<[1], [0], [0], [1], [0, 0, 1, 1], [], []>} : vector<16x6xbf16>, vector<6x24xbf16>, vector<16x24xf32> -> vector<16x24xf32>
    %9 = arith.addf %3, %8 : vector<16x24xf32>
    %c0_6 = arith.constant 0 : index
    %c0_7 = arith.constant 0 : index
    %10 = vector.load %arg6[%c0_6, %c0_7] : memref<16x24xf32, #tpu.memory_space<vmem>>, vector<16x24xf32>
    tpu.vector_store %arg6[%c0_6, %c0_7], %9 {strides = array<i32>} : memref<16x24xf32, #tpu.memory_space<vmem>>, vector<16x24xf32>,
    %c0_i32_8 = arith.constant 0 : i32
    %11 = arith.cmpi eq, %arg2, %c0_i32_8 : i32
    %12 = arith.extui %11 : i1 to i32
    %c0_i32_9 = arith.constant 0 : i32
    %13 = arith.cmpi ne, %12, %c0_i32_9 : i32
    scf.if %13 {
      %c0_10 = arith.constant 0 : index
      %c0_11 = arith.constant 0 : index
      %14 = vector.load %arg6[%c0_10, %c0_11] : memref<16x24xf32, #tpu.memory_space<vmem>>, vector<16x24xf32>
      %15 = arith.truncf %14 : vector<16x24xf32> to vector<16x24xbf16>
      %c0_12 = arith.constant 0 : index
      %c0_13 = arith.constant 0 : index
      %16 = vector.load %arg5[%c0_12, %c0_13] : memref<16x24xbf16, #tpu.memory_space<vmem>>, vector<16x24xbf16>
      tpu.vector_store %arg5[%c0_12, %c0_13], %15 {strides = array<i32>} : memref<16x24xbf16, #tpu.memory_space<vmem>>, vector<16x24xbf16>,
    } else {
    }
    return
  }
  func.func @transform_0(%arg0: i32, %arg1: i32, %arg2: i32) -> (i32, i32) {
    %c0_i32 = arith.constant 0 : i32
    return %arg0, %arg2 : i32, i32
  }
  func.func @transform_1(%arg0: i32, %arg1: i32, %arg2: i32) -> (i32, i32) {
    %c0_i32 = arith.constant 0 : i32
    return %arg2, %arg1 : i32, i32
  }
  func.func @transform_2(%arg0: i32, %arg1: i32, %arg2: i32) -> (i32, i32) {
    %c0_i32 = arith.constant 0 : i32
    return %arg0, %arg1 : i32, i32
  }
}

</mosaic_0001>

<bundles_post_ra>
// kernel: tpu_custom_call.1
= control target key start
LH: loop header
LB: loop body
LE: loop exit
PB: predicated region body
PF: predicated region fallthrough
CT: control target
= control target key end

     0   :  { %vm17_vm0 = vcmask 195584   ;;  %vm31_vm1 = vcmask 1042432   ;;  %v153_v1 = vmov 0.0   ;;  %vm154_vm2 = vmmov 0   ;;  %s189_s0 = inlined_call_operand.vmem [shape: f32[16,6], index: 0, kind: input, shape index: {}]   ;;  %s190_s1 = inlined_call_operand.vmem [shape: f32[6,24], index: 1, kind: input, shape index: {}]   ;;  %s191_s2 = inlined_call_operand.hbm [shape: bf16[16,24], index: 2, kind: output, shape index: {}]  }
   0x1   :  { %v25_v0 = vld [vmem:[%s190_s1] sm:$0x3f]  ;;  %18 = vst.msk [vmem:[#allocation2] sm:$0xff] %vm17_vm0, %v153_v1  ;;  %19 = vst.msk [vmem:[#allocation2 + $0x8] sm:$0xff] %vm17_vm0, %v153_v1  ;;  %120 = vmatprep.subr.bf16.mxu0 %v153_v1  ;;  %122 = vmatprep.mubr.msk.bf16.mxu0 %vm154_vm2, %v153_v1  ;;  %v23_v4 = vld [vmem:[%s189_s0 + $0x8] sm:$0xff] }
   0x2   :  { %v26_v2 = vpack.c.bf16 %v25_v0, %v25_v0  ;;  %v22_v3 = vld [vmem:[%s189_s0] sm:$0xff] }
   0x3   :  { %7 = vsyncpa [#allocation4], 0  ;;  %v24_v6 = vpack.c.bf16 %v23_v4, %v22_v3  ;;  %vm27_vm3 = vcmask 48128   ;;  %vm94_vm4 = vcmask 191488   ;;  %s155_s0 = smov [#allocation3]  }
   0x4   :  { %v33_v5 = vsel %vm31_vm1, %v26_v2, 0  ;;  %s102_s1 = sshll.u32 %s155_s0, 4  ;;  %s103_s1 = int_to_ptr.vmem [resolvable:$true] %s102_s1 }
   0x5   :  { %121 = vmatpush3.bf16.msra.mxu0 %v33_v5  ;;  %s131_s15 = scalar_lea.vmem %s103_s1, 128  ;;  %p136_p1 = scmp.lt.s32.totalorder %s103_s1, %s103_s1 }
   0x6   :  { %p132_p0 = scmp.ne.s32.totalorder %s103_s1, %s131_s15  ;;  %p137_p2 = scmp.lt.s32.totalorder %s131_s15, %s131_s15 }
   0x8   :  { %123 = vmatmul.mubr.msk.bf16.vlgmr.msra.gmra.mxu0 %vm27_vm3, %v24_v6  ;;  %v20_v7 = vld [vmem:[#allocation2] sm:$0xff]  ;;  %v21_v11 = vld [vmem:[#allocation2 + $0x8] sm:$0xff]  ;;  %p138_p3 = por %p137_p2, %p136_p1 }
   0xa   :  { %p139_p4 = pnand %p138_p3, %p132_p0 }
  0xc8   :  { %v69_v8 = vpop.f32.mrf.mxu0 }
  0xc9   :  { %v76_v9 = vadd.f32 %v69_v8, %v20_v7 }
  0xca   :  { %v124_v10 = vpop.f32.mrf.mxu0 }
  0xcb   :  { %79 = vst.msk [vmem:[#allocation2] sm:$0xff] %vm17_vm0, %v76_v9 }
  0xcc   :  { %v72_v12 = vpop.f32.mrf.mxu0 }
  0xcd   :  { %v77_v13 = vadd.f32 %v72_v12, %v21_v11 }
  0xce   :  { %v125_v14 = vpop.f32.mrf.mxu0 }
  0xcf   :  { %80 = vst.msk [vmem:[#allocation2 + $0x8] sm:$0xff] %vm17_vm0, %v77_v13 }
  0xd2   :  { %v84_v15 = vld [vmem:[#allocation2] sm:$0xff] }
  0xd3   :  { %v116_v16 = vpack.c.bf16 %v84_v15, %v84_v15 }
  0xd5   :  { %95 = vst.msk [vmem:[#allocation3] sm:$0xf] %vm94_vm4, %v116_v16 }
  0xd6   :  { %v85_v17 = vld [vmem:[#allocation2 + $0x8] sm:$0xff] }
  0xd7   :  { %v117_v18 = vpack.c.bf16 %v85_v17, %v85_v17 }
  0xd9   :  { %96 = vst.msk [vmem:[#allocation3 + $0x4] sm:$0xf] %vm94_vm4, %v117_v18 }
  0xda   :  { %142 = shalt.err (!%p139_p4)
}
  0xdb   :  { %s156_s16 = smov 64   ;;  %s157_s17 = smov 4  }
  0xdc   :  { %108 = dma.vmem_to_hbm [thread:$0]  %s103_s1, 128, %s191_s2, [#allocation4], %s156_s16, %s156_s16, %s157_s17  }
  0xdd   :  { %151 = dma.done.wait [#allocation4], 128  }
  0xde   :  { %152 = vsyncadd [#allocation4], 4294967168 }
  0xdf   :  { %112 = vsyncpa [#allocation4], 1 }

</bundles_post_ra>
